<compile_context>
chip_gen: v5e
topology: v5e:2x2
jax: 0.10.0
libtpu: 0.0.40
codegen_flags: <defaults>
</compile_context>

<pallas_src>
import functools

import jax
import jax.numpy as jnp
from jax import lax
from jax.experimental import pallas as pl
from jax.experimental.pallas import tpu as pltpu


# ---------------------------------------------------------------------------
# Kernels
# ---------------------------------------------------------------------------

def _catavgmax_single_kernel(x_ref, avg_ref, max_ref, *, inv_hw):
    """Whole H*W fits in one lane block per row tile: reduce and emit."""
    x = x_ref[...]                                         # (R, HW)
    rows = x.shape[0]
    row_max = jnp.max(x, axis=-1)                          # (R,)  native dtype
    row_sum = jnp.sum(x.astype(jnp.float32), axis=-1)      # (R,)  f32 accumulate
    # Lane-dense stores: row index lives on lanes of the (1, R) output block.
    avg_ref[...] = (row_sum * inv_hw).astype(avg_ref.dtype).reshape(1, rows)
    max_ref[...] = row_max.astype(max_ref.dtype).reshape(1, rows)


def _catavgmax_multi_kernel(x_ref, avg_ref, max_ref, sum_acc, max_acc, *,
                            hw, hw_tile, inv_hw, ragged):
    """H*W split over a reduction grid axis with lane-major f32 accumulators."""
    k = pl.program_id(1)

    @pl.when(k == 0)
    def _init():
        sum_acc[...] = jnp.zeros_like(sum_acc)
        max_acc[...] = jnp.full_like(max_acc, -jnp.inf)

    x = x_ref[...]                                         # (R, hw_tile)
    rows = x.shape[0]
    if ragged:
        # Last H*W tile may extend past the true extent: mask padded lanes
        # with 0 (sum) / -inf (max).  (1, hw_tile) mask broadcasts over rows.
        lane = lax.broadcasted_iota(jnp.int32, (1, hw_tile), 1)
        valid = (k * hw_tile + lane) < hw
        x_max_in = jnp.where(valid, x, jnp.array(-jnp.inf, dtype=x.dtype))
        x_sum_in = jnp.where(valid, x.astype(jnp.float32), jnp.float32(0))
    else:
        x_max_in = x
        x_sum_in = x.astype(jnp.float32)

    part_max = jnp.max(x_max_in, axis=-1).astype(jnp.float32).reshape(1, rows)
    part_sum = jnp.sum(x_sum_in, axis=-1).reshape(1, rows)
    sum_acc[...] = sum_acc[...] + part_sum
    max_acc[...] = jnp.maximum(max_acc[...], part_max)

    @pl.when(k == pl.num_programs(1) - 1)
    def _finalize():
        avg_ref[...] = (sum_acc[...] * inv_hw).astype(avg_ref.dtype)
        max_ref[...] = max_acc[...].astype(max_ref.dtype)


# ---------------------------------------------------------------------------
# Wrapper
# ---------------------------------------------------------------------------

_TARGET_BLOCK_BYTES = 8 * 1024 * 1024   # VMEM cost target per in-flight block
_VMEM_LIMIT = 32 * 1024 * 1024          # safe scoped-VMEM limit on v5e/v6e/v7x


def adaptive_catavgmax_pool2d(x, output_size=1, *,
                              block_bytes=_TARGET_BLOCK_BYTES):
    """JAX/Pallas equivalent of the PyTorch adaptive_catavgmax_pool2d.

    x: (N, C, H, W).  Returns (N, 2*C, 1, 1).
    """
    # TODO(synk): only global pooling (output_size == 1) is implemented; the
    # generic adaptive-bin case needs per-output-window slicing.
    assert output_size == 1, "only output_size=1 supported"
    if not jnp.issubdtype(x.dtype, jnp.floating):
        raise NotImplementedError("floating-point inputs only")

    N, C, H, W = x.shape
    NC, HW = N * C, H * W
    x2d = x.reshape(NC, HW)                     # free: contiguous view

    itemsize = jnp.dtype(x.dtype).itemsize
    # VMEM cost per input-block row: lanes pad up to a multiple of 128, and
    # sub-32-bit inputs also materialise an f32 copy for the sum reduction.
    padded_hw = pl.cdiv(HW, 128) * 128
    cost_per_elem = itemsize + (4 if itemsize < 4 else 0)
    row_bytes = padded_hw * cost_per_elem
    inv_hw = float(1.0 / HW)

    cost_estimate = pl.CostEstimate(
        flops=2 * NC * HW,
        transcendentals=0,
        bytes_accessed=NC * HW * itemsize + 2 * NC * itemsize,
    )
    # Lane-dense outputs: (1, NC), row index on lanes.
    out_shape = (
        jax.ShapeDtypeStruct((1, NC), x.dtype),
        jax.ShapeDtypeStruct((1, NC), x.dtype),
    )
    compiler_params = lambda sem: pltpu.CompilerParams(   # noqa: E731
        dimension_semantics=sem, vmem_limit_bytes=_VMEM_LIMIT)

    if NC * row_bytes <= block_bytes or 128 * row_bytes <= block_bytes:
        # ---- common path: whole H*W in one lane block per row tile --------
        if NC * row_bytes <= block_bytes:
            tile_rows = NC                      # full-dim block is always legal
        else:
            # Multiple of 128 so the lane-dense output block stays legal.
            tile_rows = (block_bytes // row_bytes) // 128 * 128
        grid = (pl.cdiv(NC, tile_rows),)

        kernel = functools.partial(_catavgmax_single_kernel, inv_hw=inv_hw)
        avg2d, max2d = pl.pallas_call(
            kernel,
            out_shape=out_shape,
            grid=grid,
            in_specs=[pl.BlockSpec((tile_rows, HW), lambda i: (i, 0))],
            out_specs=(
                pl.BlockSpec((1, tile_rows), lambda i: (0, i)),
                pl.BlockSpec((1, tile_rows), lambda i: (0, i)),
            ),
            compiler_params=compiler_params(("parallel",)),
            cost_estimate=cost_estimate,
        )(x2d)
    else:
        # ---- large spatial: tile H*W on a last, "arbitrary" grid axis -----
        tile_rows = NC if NC < 128 else 128
        hw_tile = (block_bytes // (max(tile_rows, 8) * cost_per_elem))
        hw_tile = max((hw_tile // 128) * 128, 128)
        ragged = (HW % hw_tile) != 0
        grid = (pl.cdiv(NC, tile_rows), pl.cdiv(HW, hw_tile))

        kernel = functools.partial(
            _catavgmax_multi_kernel,
            hw=HW, hw_tile=hw_tile, inv_hw=inv_hw, ragged=ragged,
        )
        avg2d, max2d = pl.pallas_call(
            kernel,
            out_shape=out_shape,
            grid=grid,
            in_specs=[pl.BlockSpec((tile_rows, hw_tile), lambda i, k: (i, k))],
            out_specs=(
                pl.BlockSpec((1, tile_rows), lambda i, k: (0, i)),
                pl.BlockSpec((1, tile_rows), lambda i, k: (0, i)),
            ),
            scratch_shapes=[
                pltpu.VMEM((1, tile_rows), jnp.float32),   # running sum
                pltpu.VMEM((1, tile_rows), jnp.float32),   # running max
            ],
            compiler_params=compiler_params(("parallel", "arbitrary")),
            cost_estimate=cost_estimate,
        )(x2d)

    x_avg = avg2d.reshape(N, C, 1, 1)
    x_max = max2d.reshape(N, C, 1, 1)
    # Tiny (N, 2C, 1, 1) concat; negligible next to the HBM read of the input.
    return jnp.concatenate((x_avg, x_max), axis=1)


class AdaptiveCatAvgMaxPool2d:
    """Stateless module matching the PyTorch class (no parameters)."""

    def __init__(self, output_size=1):
        self.output_size = output_size

    def __call__(self, x):
        return adaptive_catavgmax_pool2d(x, self.output_size)


if __name__ == "__main__":
    key = jax.random.PRNGKey(0)
    k1, k2, k3, k4 = jax.random.split(key, 4)

    def _ref(x):
        xf = x.astype(jnp.float32)
        avg = jnp.mean(xf, axis=(2, 3), keepdims=True)
        mx = jnp.max(xf, axis=(2, 3), keepdims=True)
        return jnp.concatenate((avg, mx), axis=1).astype(x.dtype)

    mod = AdaptiveCatAvgMaxPool2d(output_size=1)

    # 1) Small NCHW input -> single-block path (tile_rows == NC).
    x1 = jax.random.normal(k1, (2, 4, 16, 16), dtype=jnp.float32)
    out1 = mod(x1)
    jax.block_until_ready(out1)
    assert out1.shape == (2, 8, 1, 1), out1.shape
    assert jnp.allclose(out1, _ref(x1), atol=1e-5, rtol=1e-5), "mismatch (small)"

    # 2) Force the H*W-reduction ("multi") path with a ragged last HW tile by
    #    shrinking the block budget (same kernel code path as huge images).
    x2 = jax.random.normal(k2, (1, 8, 48, 48), dtype=jnp.float32)
    out2 = adaptive_catavgmax_pool2d(x2, 1, block_bytes=64 * 1024)
    jax.block_until_ready(out2)
    assert out2.shape == (1, 16, 1, 1), out2.shape
    assert jnp.allclose(out2, _ref(x2), atol=1e-4, rtol=1e-5), "mismatch (multi)"

    # 3) Force the single path with multiple row tiles and a ragged last row
    #    tile (lane-masked output stores).
    x3 = jax.random.normal(k3, (2, 144, 14, 14), dtype=jnp.float32)
    out3 = adaptive_catavgmax_pool2d(x3, 1, block_bytes=256 * 1024)
    jax.block_until_ready(out3)
    assert out3.shape == (2, 288, 1, 1), out3.shape
    assert jnp.allclose(out3, _ref(x3), atol=1e-4, rtol=1e-5), "mismatch (tiled rows)"

    # 4) bf16 input: max exact, mean accumulated in f32 then rounded to bf16.
    x4 = jax.random.normal(k4, (2, 4, 16, 16), dtype=jnp.bfloat16)
    out4 = mod(x4)
    jax.block_until_ready(out4)
    assert out4.shape == (2, 8, 1, 1), out4.shape
    assert jnp.allclose(out4.astype(jnp.float32), _ref(x4).astype(jnp.float32),
                        atol=2e-2, rtol=2e-2), "mismatch (bf16)"

    print("KERNEL_OK")
</pallas_src>

<mosaic_0001>
module attributes {stable_mosaic.version = 11 : i64} {
  func.func @_catavgmax_single_kernel(%arg0: i32, %arg1: memref<8x256xf32, #tpu.memory_space<vmem>>, %arg2: memref<1x8xf32, #tpu.memory_space<vmem>>, %arg3: memref<1x8xf32, #tpu.memory_space<vmem>>) attributes {dimension_semantics = [#tpu.dimension_semantics<parallel>], iteration_bounds = array<i64: 1>, scalar_prefetch = 0 : i64, scratch_operands = 0 : i64, tpu.core_type = #tpu.core_type<tc>, window_params = [{transform_indices = @transform_0, window_bounds = array<i64: 8, 256>}, {transform_indices = @transform_1, window_bounds = array<i64: 1, 8>}, {transform_indices = @transform_2, window_bounds = array<i64: 1, 8>}]} {
    %c0 = arith.constant 0 : index
    %c0_0 = arith.constant 0 : index
    %0 = vector.load %arg1[%c0, %c0_0] : memref<8x256xf32, #tpu.memory_space<vmem>>, vector<8x256xf32>
    %cst = arith.constant dense<0xFF800000> : vector<8xf32>
    %1 = vector.multi_reduction <maximumf>, %0, %cst [1] : vector<8x256xf32> to vector<8xf32>
    %cst_1 = arith.constant dense<0.000000e+00> : vector<8xf32>
    %2 = vector.multi_reduction <add>, %0, %cst_1 [1] : vector<8x256xf32> to vector<8xf32>
    %cst_2 = arith.constant 3.906250e-03 : f32
    %3 = vector.broadcast %cst_2 : f32 to vector<8xf32>
    %4 = arith.mulf %2, %3 : vector<8xf32>
    %5 = vector.shape_cast %4 : vector<8xf32> to vector<1x8xf32>
    %c0_3 = arith.constant 0 : index
    %c0_4 = arith.constant 0 : index
    %6 = vector.load %arg2[%c0_3, %c0_4] : memref<1x8xf32, #tpu.memory_space<vmem>>, vector<1x8xf32>
    tpu.vector_store %arg2[%c0_3, %c0_4], %5 {strides = array<i32>} : memref<1x8xf32, #tpu.memory_space<vmem>>, vector<1x8xf32>,
    %7 = vector.shape_cast %1 : vector<8xf32> to vector<1x8xf32>
    %c0_5 = arith.constant 0 : index
    %c0_6 = arith.constant 0 : index
    %8 = vector.load %arg3[%c0_5, %c0_6] : memref<1x8xf32, #tpu.memory_space<vmem>>, vector<1x8xf32>
    tpu.vector_store %arg3[%c0_5, %c0_6], %7 {strides = array<i32>} : memref<1x8xf32, #tpu.memory_space<vmem>>, vector<1x8xf32>,
    return
  }
  func.func @transform_0(%arg0: i32) -> (i32, i32) {
    %c0_i32 = arith.constant 0 : i32
    %c0_i32_0 = arith.constant 0 : i32
    return %arg0, %c0_i32 : i32, i32
  }
  func.func @transform_1(%arg0: i32) -> (i32, i32) {
    %c0_i32 = arith.constant 0 : i32
    %c0_i32_0 = arith.constant 0 : i32
    return %c0_i32, %arg0 : i32, i32
  }
  func.func @transform_2(%arg0: i32) -> (i32, i32) {
    %c0_i32 = arith.constant 0 : i32
    %c0_i32_0 = arith.constant 0 : i32
    return %c0_i32, %arg0 : i32, i32
  }
}

</mosaic_0001>

<bundles_post_ra>
// kernel: tpu_custom_call.1
= control target key start
LH: loop header
LB: loop body
LE: loop exit
PB: predicated region body
PF: predicated region fallthrough
CT: control target
= control target key end

     0   :  { %8 = vsyncpa [#allocation3], 0  ;;  %s187_s0 = inlined_call_operand.hbm [shape: f32[8,256], index: 0, kind: input, shape index: {}]   ;;  %s188_s1 = inlined_call_operand.hbm [shape: f32[1,8], index: 1, kind: output, shape index: {0}]   ;;  %s189_s2 = inlined_call_operand.hbm [shape: f32[1,8], index: 2, kind: output, shape index: {1}]  }
   0x1   :  { %9 = vsyncpa [#allocation4], 0 }
   0x2   :  { %10 = vsyncpa [#allocation7], 0  ;;  %s16_s11 = sshll.u32 %s187_s0, 4  ;;  %s160_s12 = smov [#allocation2]   ;;  %s17_s11 = int_to_ptr.hbm [resolvable:$true] %s16_s11 }
   0x3   :  { %s18_s13 = sshll.u32 %s160_s12, 4  ;;  %s19_s13 = int_to_ptr.vmem [resolvable:$true] %s18_s13 }
   0x4   :  { %21 = dma.hbm_to_vmem [thread:$0]  %s17_s11, 256, %s19_s13, [#allocation3]  }
   0x5   :  { %154 = dma.done.wait [#allocation3], 256  }
   0x6   :  { %155 = vsyncadd [#allocation3], 4294967040  ;;  %v26_v0 = vld [vmem:[#allocation2] sm:$0xff]  ;;  %v27_v1 = vld [vmem:[#allocation2 + $0x8] sm:$0xff]  ;;  %v36_v4 = vlaneseq  ;;  %s161_s14 = smov [#allocation5]   ;;  %s53_s17 = sshll.u32 %s188_s1, 4  ;;  %s54_s17 = int_to_ptr.hbm [resolvable:$true] %s53_s17 }
   0x7   :  { %v31_v2 = vadd.f32 %v27_v1, %v26_v0  ;;  %v28_v3 = vmax.f32 %v26_v0, %v27_v1  ;;  %s51_s15 = sshll.u32 %s161_s14, 4  ;;  %vm40_vm0 = vcmask 57344   ;;  %s162_s18 = smov [#allocation6]   ;;  %s52_s15 = int_to_ptr.vmem [resolvable:$true] %s51_s15 }
   0x8   :  { %v37_v5 = vand.u32 127, %v36_v4  ;;  %s62_s19 = sshll.u32 %s162_s18, 4  ;;  %s64_s22 = sshll.u32 %s189_s2, 4  ;;  %s63_s19 = int_to_ptr.vmem [resolvable:$true] %s62_s19  ;;  %s65_s22 = int_to_ptr.hbm [resolvable:$true] %s64_s22 }
   0x9   :  { %32 = vadd.xlane.f32.xlu0 %v31_v2 }
  0x11   :  { %29 = vmax.xlane.f32.xlu0 %v28_v3 }
  0x7c   :  { %v33_v6 = vpop.xlane.xlu0 %32 }
  0x7d   :  { %v34_v7 = vmul.f32 0.00390625, %v33_v6 }
  0x7f   :  { %v38_v8 = vperm.slane %v34_v7, %v37_v5 }
  0x81   :  { %41 = vst.msk [vmem:[#allocation5] sm:$0x1] %vm40_vm0, %v38_v8 }
  0x82   :  { %56 = dma.vmem_to_hbm [thread:$0]  %s52_s15, 16, %s54_s17, [#allocation4]  }
  0x84   :  { %v30_v9 = vpop.xlane.xlu0 %29 }
  0x85   :  { %v43_v10 = vperm.slane %v30_v9, %v37_v5 }
  0x87   :  { %45 = vst.msk [vmem:[#allocation6] sm:$0x1] %vm40_vm0, %v43_v10 }
  0x88   :  { %67 = dma.vmem_to_hbm [thread:$0]  %s63_s19, 16, %s65_s22, [#allocation7]  }
  0x89   :  { %156 = dma.done.wait [#allocation4], 16  }
  0x8a   :  { %157 = vsyncadd [#allocation4], 4294967280 }
  0x8b   :  { %158 = dma.done.wait [#allocation7], 16  }
  0x8c   :  { %159 = vsyncadd [#allocation7], 4294967280 }
  0x8d   :  { %76 = vsyncpa [#allocation3], 1 }
  0x8e   :  { %77 = vsyncpa [#allocation4], 1 }
  0x8f   :  { %78 = vsyncpa [#allocation7], 1 }

</bundles_post_ra>
